<compile_context>
chip_gen: v5e
topology: v5e:2x2
jax: 0.10.0
libtpu: 0.0.40
codegen_flags: <defaults>
</compile_context>

<pallas_src>
import functools

import jax
import jax.numpy as jnp
from jax import lax
from jax.experimental import pallas as pl
from jax.experimental.pallas import tpu as pltpu

EPS = 1e-5  # nn.BatchNorm2d default eps


def _vmem_limit_bytes():
    """Generation-aware VMEM limit: ~75% of capacity, capped at 96 MiB."""
    cap = 64 * 1024 * 1024  # conservative fallback (v7x physical per-TC VMEM)
    try:
        info = pltpu.get_tpu_info()
        cap = int(getattr(info, "vmem_capacity_bytes", cap))
    except Exception:
        pass
    return min(cap * 3 // 4, 96 * 1024 * 1024)


def _conv_relu_slab(xs_ref, w_ref, b_ref, shifts, ly):
    """ReLU(conv+bias) slab (4*C_out, Ly); rows grouped by 2x2 pool offset.

    Conv3x3+pool is expressed as 4 matmuls of the folded weight matrices
    against lane-shifted windows of the space-to-depth-packed input tile.
    """
    xw = xs_ref[0]                                         # (4*C_in, TL) f32
    acc = None
    for s, off in enumerate(shifts):                       # 4 static iterations
        part = jnp.dot(w_ref[s], xw[:, off:off + ly],
                       preferred_element_type=jnp.float32)
        acc = part if acc is None else acc + part
    return jnp.maximum(acc + b_ref[...], 0.0)              # (4*C_out, Ly)


def _stats_kernel(xs_ref, w_ref, b_ref, mask_ref, psum_ref, psq_ref, *, shifts, ly):
    """Pass 1: per-tile BN partial sum / sum-of-squares (tile axis parallel)."""
    y = _conv_relu_slab(xs_ref, w_ref, b_ref, shifts, ly)  # (4*C_out, Ly)
    m = mask_ref[0, :, :ly]                                # (1, Ly) validity mask
    ym = y * m
    psum_ref[0] = jnp.sum(ym, axis=1, keepdims=True)       # (4*C_out, 1)
    psq_ref[0] = jnp.sum(ym * y, axis=1, keepdims=True)    # masked sum of y^2


def _apply_kernel(xs_ref, w_ref, b_ref, scale_ref, shift_ref, o_ref, *,
                  shifts, ly, c_out):
    """Pass 2: conv + ReLU + BN affine + 2x2 max-pool (tile axis parallel)."""
    y = _conv_relu_slab(xs_ref, w_ref, b_ref, shifts, ly)  # (4*C_out, Ly)
    # BN affine BEFORE the max (gamma may be negative -> max/BN don't commute).
    y = y * scale_ref[...] + shift_ref[...]
    p01 = jnp.maximum(y[0 * c_out:1 * c_out], y[1 * c_out:2 * c_out])
    p23 = jnp.maximum(y[2 * c_out:3 * c_out], y[3 * c_out:4 * c_out])
    pooled = jnp.maximum(p01, p23)                         # (C_out, Ly)
    # TODO(synk): training-mode Dropout(p=0.1) omitted (identity / eval behavior).
    tail = o_ref.shape[2] - ly
    o_ref[0, :, ly:] = jnp.zeros((c_out, tail), pooled.dtype)
    o_ref[0, :, :ly] = pooled


def conv_block_forward(x_nchw, w_oihw, b, gamma, beta):
    """ConvBlock forward. x: (N, C_in, H, W) f32 -> (N, C_out, H//2, W//2)."""
    N, C_in, H, W = x_nchw.shape
    C_out = w_oihw.shape[0]
    assert w_oihw.shape[1:] == (C_in, 3, 3)
    assert H % 2 == 0 and W % 2 == 0
    Ho, Wo = H // 2, W // 2
    Hp, Wp = Ho + 1, Wo + 1                 # space-to-depth plane of padded input
    plane = Hp * Wp
    cin4, cout4 = 4 * C_in, 4 * C_out
    shifts = (0, 1, Wp, Wp + 1)             # the 4 folded-weight window shifts
    halo = Wp + 1

    # ---- tile sizing: whole padded images per lane tile ---------------------
    vmem_limit = _vmem_limit_bytes()
    per_lane = 4 * (2 * cin4 + 2 * C_out + 2 * cout4 + cin4)   # f32 bytes / lane
    max_lanes = min(max(plane, (vmem_limit // 3) // per_lane), 32768)
    tni = max(1, min(N, max_lanes // plane))       # images per tile
    n_tiles = -(-N // tni)
    n_pad = n_tiles * tni
    tl = tni * plane                                # lanes per tile
    ly = tl - halo                                  # computed lanes per tile
    # TODO(synk): very large single images would need row-block (halo) tiling;
    # whole-image lane tiles are ample for ConvBlock-scale feature maps.

    # ---- input prep: pad + space-to-depth pack (single ~1.3x rearrangement) -
    xb = x_nchw
    if n_pad != N:
        xb = jnp.pad(xb, ((0, n_pad - N), (0, 0), (0, 0), (0, 0)))
    xp = jnp.pad(jnp.transpose(xb, (1, 0, 2, 3)),
                 ((0, 0), (0, 0), (1, 1), (1, 1)))             # (C_in, n_pad, H+2, W+2)
    xs = xp.reshape(C_in, n_tiles, tni, Hp, 2, Wp, 2)
    xs = jnp.transpose(xs, (1, 4, 6, 0, 2, 3, 5))              # (t, pr, pc, ci, nl, i, j)
    xs = xs.reshape(n_tiles, cin4, tl)                         # lane = nl*plane + i*Wp + j

    # ---- weights: conv3x3 (+ pool offsets) folded into 4 shift matrices -----
    wpad = jnp.pad(w_oihw, ((0, 0), (0, 0), (1, 1), (1, 1)))   # (C_out, C_in, 5, 5)
    wmats = []
    for ri in (0, 1):
        for cj in (0, 1):
            rows = []
            for dh in (0, 1):
                for dw in (0, 1):
                    cols = [wpad[:, :, 2 * ri + pr - dh + 1, 2 * cj + pc - dw + 1]
                            for pr in (0, 1) for pc in (0, 1)]
                    rows.append(jnp.concatenate(cols, axis=1))     # (C_out, 4*C_in)
            wmats.append(jnp.concatenate(rows, axis=0))            # (4*C_out, 4*C_in)
    wmats = jnp.stack(wmats, axis=0).astype(jnp.float32)           # (4, 4*C_out, 4*C_in)
    b4 = jnp.tile(b.reshape(1, C_out), (4, 1)).reshape(cout4, 1)

    # validity mask over lanes (drops the extra plane row/col + batch padding)
    vi = (jnp.arange(Hp) < Ho).reshape(1, Hp, 1)
    vj = (jnp.arange(Wp) < Wo).reshape(1, 1, Wp)
    vn = (jnp.arange(n_pad) < N).reshape(n_pad, 1, 1)
    mask = (vi & vj & vn).astype(jnp.float32).reshape(n_tiles, 1, tl)

    cparams = pltpu.CompilerParams(dimension_semantics=("parallel",),
                                   vmem_limit_bytes=vmem_limit)

    # ---- pass 1: per-tile BN partial statistics ------------------------------
    psum, psq = pl.pallas_call(
        functools.partial(_stats_kernel, shifts=shifts, ly=ly),
        out_shape=(jax.ShapeDtypeStruct((n_tiles, cout4, 1), jnp.float32),
                   jax.ShapeDtypeStruct((n_tiles, cout4, 1), jnp.float32)),
        grid_spec=pltpu.PrefetchScalarGridSpec(
            num_scalar_prefetch=0, grid=(n_tiles,),
            in_specs=[
                pl.BlockSpec((1, cin4, tl), lambda t: (t, 0, 0)),
                pl.BlockSpec((4, cout4, cin4), lambda t: (0, 0, 0)),
                pl.BlockSpec((cout4, 1), lambda t: (0, 0)),
                pl.BlockSpec((1, 1, tl), lambda t: (t, 0, 0)),
            ],
            out_specs=(pl.BlockSpec((1, cout4, 1), lambda t: (t, 0, 0)),
                       pl.BlockSpec((1, cout4, 1), lambda t: (t, 0, 0)))),
        compiler_params=cparams,
    )(xs, wmats, b4, mask)

    # ---- BN batch statistics (training-mode, biased variance) ----------------
    # Per-tile partials combined hierarchically to limit sum/sumsq cancellation.
    cnt = float(N * H * W)
    ssum = jnp.sum(psum[:, :, 0], axis=0).reshape(4, C_out).sum(axis=0)
    ssq = jnp.sum(psq[:, :, 0], axis=0).reshape(4, C_out).sum(axis=0)
    mean = ssum / cnt
    var = jnp.maximum(ssq / cnt - mean * mean, 0.0)
    scale = gamma * lax.rsqrt(var + EPS)
    shift = beta - mean * scale
    scale4 = jnp.tile(scale.reshape(1, C_out), (4, 1)).reshape(cout4, 1)
    shift4 = jnp.tile(shift.reshape(1, C_out), (4, 1)).reshape(cout4, 1)

    # ---- pass 2: conv + ReLU + BN affine + 2x2 max-pool ----------------------
    out_t = pl.pallas_call(
        functools.partial(_apply_kernel, shifts=shifts, ly=ly, c_out=C_out),
        out_shape=jax.ShapeDtypeStruct((n_tiles, C_out, tl), jnp.float32),
        grid_spec=pltpu.PrefetchScalarGridSpec(
            num_scalar_prefetch=0, grid=(n_tiles,),
            in_specs=[
                pl.BlockSpec((1, cin4, tl), lambda t: (t, 0, 0)),
                pl.BlockSpec((4, cout4, cin4), lambda t: (0, 0, 0)),
                pl.BlockSpec((cout4, 1), lambda t: (0, 0)),
                pl.BlockSpec((cout4, 1), lambda t: (0, 0)),
                pl.BlockSpec((cout4, 1), lambda t: (0, 0)),
            ],
            out_specs=pl.BlockSpec((1, C_out, tl), lambda t: (t, 0, 0))),
        compiler_params=cparams,
    )(xs, wmats, b4, scale4, shift4)

    # lane-dense tiles -> NCHW; drop the extra plane row/col and batch padding.
    out = out_t.reshape(n_tiles, C_out, tni, Hp, Wp)
    out = jnp.transpose(out, (0, 2, 1, 3, 4)).reshape(n_pad, C_out, Hp, Wp)
    return out[:N, :, :Ho, :Wo]


def conv_block_reference(x, w, b, gamma, beta):
    """Pure-JAX reference with identical semantics (NCHW)."""
    y = lax.conv_general_dilated(
        x, w, window_strides=(1, 1), padding=((1, 1), (1, 1)),
        dimension_numbers=("NCHW", "OIHW", "NCHW"),
        precision=lax.Precision.HIGHEST)
    y = y + b[None, :, None, None]
    y = jnp.maximum(y, 0.0)
    mean = jnp.mean(y, axis=(0, 2, 3), keepdims=True)
    var = jnp.mean((y - mean) ** 2, axis=(0, 2, 3), keepdims=True)
    y = (y - mean) * lax.rsqrt(var + EPS)
    y = y * gamma[None, :, None, None] + beta[None, :, None, None]
    y = lax.reduce_window(y, -jnp.inf, lax.max, (1, 1, 2, 2), (1, 1, 2, 2), "VALID")
    return y


if __name__ == "__main__":
    key = jax.random.PRNGKey(0)
    kx, kw, kb, kg, kbe = jax.random.split(key, 5)

    # Small shapes consistent with ConvBlock(in_channels=4, out_channels=8)
    N, C_in, H, W, C_out, K = 2, 4, 16, 16, 8, 3
    fan_in = C_in * K * K

    x = jax.random.normal(kx, (N, C_in, H, W), jnp.float32)
    w = jax.random.uniform(kw, (C_out, C_in, K, K), jnp.float32, -1.0, 1.0) / jnp.sqrt(fan_in)
    b = jax.random.uniform(kb, (C_out,), jnp.float32, -1.0, 1.0) / jnp.sqrt(fan_in)
    gamma = 1.0 + 0.1 * jax.random.normal(kg, (C_out,), jnp.float32)
    beta = 0.1 * jax.random.normal(kbe, (C_out,), jnp.float32)

    out = jax.jit(conv_block_forward)(x, w, b, gamma, beta)
    out = jax.block_until_ready(out)

    assert out.shape == (N, C_out, H // 2, W // 2), out.shape

    ref = conv_block_reference(x, w, b, gamma, beta)
    if not bool(jnp.allclose(out, ref, rtol=2e-3, atol=2e-3)):
        max_err = float(jnp.max(jnp.abs(out - ref)))
        raise AssertionError(f"Pallas kernel mismatch vs reference, max abs err = {max_err}")

    print("KERNEL_OK")
</pallas_src>

<mosaic_0001>
module attributes {stable_mosaic.version = 11 : i64} {
  func.func @_stats_kernel(%arg0: i32, %arg1: memref<1x16x162xf32, #tpu.memory_space<vmem>>, %arg2: memref<4x32x16xf32, #tpu.memory_space<vmem>>, %arg3: memref<32x1xf32, #tpu.memory_space<vmem>>, %arg4: memref<1x1x162xf32, #tpu.memory_space<vmem>>, %arg5: memref<1x32x1xf32, #tpu.memory_space<vmem>>, %arg6: memref<1x32x1xf32, #tpu.memory_space<vmem>>) attributes {dimension_semantics = [#tpu.dimension_semantics<parallel>], iteration_bounds = array<i64: 1>, scalar_prefetch = 0 : i64, scratch_operands = 0 : i64, tpu.core_type = #tpu.core_type<tc>, window_params = [{transform_indices = @transform_0, window_bounds = array<i64: 1, 16, 162>}, {pipeline_mode = #tpu.pipeline_mode<synchronous>, transform_indices = @transform_1, window_bounds = array<i64: 4, 32, 16>}, {pipeline_mode = #tpu.pipeline_mode<synchronous>, transform_indices = @transform_2, window_bounds = array<i64: 32, 1>}, {transform_indices = @transform_3, window_bounds = array<i64: 1, 1, 162>}, {transform_indices = @transform_4, window_bounds = array<i64: 1, 32, 1>}, {transform_indices = @transform_5, window_bounds = array<i64: 1, 32, 1>}]} {
    %c0 = arith.constant 0 : index
    %c0_0 = arith.constant 0 : index
    %c0_1 = arith.constant 0 : index
    %0 = vector.load %arg1[%c0, %c0_0, %c0_1] : memref<1x16x162xf32, #tpu.memory_space<vmem>>, vector<1x16x162xf32>
    %1 = vector.shape_cast %0 : vector<1x16x162xf32> to vector<16x162xf32>
    %c0_2 = arith.constant 0 : index
    %c0_3 = arith.constant 0 : index
    %c0_4 = arith.constant 0 : index
    %2 = vector.load %arg2[%c0_2, %c0_3, %c0_4] : memref<4x32x16xf32, #tpu.memory_space<vmem>>, vector<1x32x16xf32>
    %3 = vector.shape_cast %2 : vector<1x32x16xf32> to vector<32x16xf32>
    %4 = vector.extract_strided_slice %1 {offsets = [0, 0], sizes = [16, 152], strides = [1, 1]} : vector<16x162xf32> to vector<16x152xf32>
    %cst = arith.constant dense<0.000000e+00> : vector<32x152xf32>
    %5 = tpu.matmul %3, %4, %cst {dimension_numbers = #tpu.dot_dimension_numbers<[1], [0], [0], [1], [0, 0, 1, 1], [], []>} : vector<32x16xf32>, vector<16x152xf32>, vector<32x152xf32> -> vector<32x152xf32>
    %c1 = arith.constant 1 : index
    %c0_5 = arith.constant 0 : index
    %c0_6 = arith.constant 0 : index
    %6 = vector.load %arg2[%c1, %c0_5, %c0_6] : memref<4x32x16xf32, #tpu.memory_space<vmem>>, vector<1x32x16xf32>
    %7 = vector.shape_cast %6 : vector<1x32x16xf32> to vector<32x16xf32>
    %8 = vector.extract_strided_slice %1 {offsets = [0, 1], sizes = [16, 152], strides = [1, 1]} : vector<16x162xf32> to vector<16x152xf32>
    %cst_7 = arith.constant dense<0.000000e+00> : vector<32x152xf32>
    %9 = tpu.matmul %7, %8, %cst_7 {dimension_numbers = #tpu.dot_dimension_numbers<[1], [0], [0], [1], [0, 0, 1, 1], [], []>} : vector<32x16xf32>, vector<16x152xf32>, vector<32x152xf32> -> vector<32x152xf32>
    %10 = arith.addf %5, %9 : vector<32x152xf32>
    %c2 = arith.constant 2 : index
    %c0_8 = arith.constant 0 : index
    %c0_9 = arith.constant 0 : index
    %11 = vector.load %arg2[%c2, %c0_8, %c0_9] : memref<4x32x16xf32, #tpu.memory_space<vmem>>, vector<1x32x16xf32>
    %12 = vector.shape_cast %11 : vector<1x32x16xf32> to vector<32x16xf32>
    %13 = vector.extract_strided_slice %1 {offsets = [0, 9], sizes = [16, 152], strides = [1, 1]} : vector<16x162xf32> to vector<16x152xf32>
    %cst_10 = arith.constant dense<0.000000e+00> : vector<32x152xf32>
    %14 = tpu.matmul %12, %13, %cst_10 {dimension_numbers = #tpu.dot_dimension_numbers<[1], [0], [0], [1], [0, 0, 1, 1], [], []>} : vector<32x16xf32>, vector<16x152xf32>, vector<32x152xf32> -> vector<32x152xf32>
    %15 = arith.addf %10, %14 : vector<32x152xf32>
    %c3 = arith.constant 3 : index
    %c0_11 = arith.constant 0 : index
    %c0_12 = arith.constant 0 : index
    %16 = vector.load %arg2[%c3, %c0_11, %c0_12] : memref<4x32x16xf32, #tpu.memory_space<vmem>>, vector<1x32x16xf32>
    %17 = vector.shape_cast %16 : vector<1x32x16xf32> to vector<32x16xf32>
    %18 = vector.extract_strided_slice %1 {offsets = [0, 10], sizes = [16, 152], strides = [1, 1]} : vector<16x162xf32> to vector<16x152xf32>
    %cst_13 = arith.constant dense<0.000000e+00> : vector<32x152xf32>
    %19 = tpu.matmul %17, %18, %cst_13 {dimension_numbers = #tpu.dot_dimension_numbers<[1], [0], [0], [1], [0, 0, 1, 1], [], []>} : vector<32x16xf32>, vector<16x152xf32>, vector<32x152xf32> -> vector<32x152xf32>
    %20 = arith.addf %15, %19 : vector<32x152xf32>
    %c0_14 = arith.constant 0 : index
    %c0_15 = arith.constant 0 : index
    %21 = vector.load %arg3[%c0_14, %c0_15] : memref<32x1xf32, #tpu.memory_space<vmem>>, vector<32x1xf32>
    %22 = vector.broadcast %21 : vector<32x1xf32> to vector<32x152xf32>
    %23 = arith.addf %20, %22 : vector<32x152xf32>
    %cst_16 = arith.constant 0.000000e+00 : f32
    %24 = vector.broadcast %cst_16 : f32 to vector<32x152xf32>
    %25 = arith.maximumf %23, %24 : vector<32x152xf32>
    %c0_17 = arith.constant 0 : index
    %c0_18 = arith.constant 0 : index
    %c0_19 = arith.constant 0 : index
    %26 = vector.load %arg4[%c0_17, %c0_18, %c0_19] : memref<1x1x162xf32, #tpu.memory_space<vmem>>, vector<1x1x152xf32>
    %27 = vector.shape_cast %26 : vector<1x1x152xf32> to vector<1x152xf32>
    %28 = vector.broadcast %27 : vector<1x152xf32> to vector<32x152xf32>
    %29 = arith.mulf %25, %28 : vector<32x152xf32>
    %cst_20 = arith.constant dense<0.000000e+00> : vector<32xf32>
    %30 = vector.multi_reduction <add>, %29, %cst_20 [1] : vector<32x152xf32> to vector<32xf32>
    %31 = vector.shape_cast %30 : vector<32xf32> to vector<32x1xf32>
    %c0_21 = arith.constant 0 : index
    %c0_22 = arith.constant 0 : index
    %c0_23 = arith.constant 0 : index
    %32 = vector.load %arg5[%c0_21, %c0_22, %c0_23] : memref<1x32x1xf32, #tpu.memory_space<vmem>>, vector<1x32x1xf32>
    %33 = vector.shape_cast %32 : vector<1x32x1xf32> to vector<32x1xf32>
    %34 = vector.shape_cast %31 : vector<32x1xf32> to vector<1x32x1xf32>
    tpu.vector_store %arg5[%c0_21, %c0_22, %c0_23], %34 {strides = array<i32>} : memref<1x32x1xf32, #tpu.memory_space<vmem>>, vector<1x32x1xf32>,
    %35 = arith.mulf %29, %25 : vector<32x152xf32>
    %cst_24 = arith.constant dense<0.000000e+00> : vector<32xf32>
    %36 = vector.multi_reduction <add>, %35, %cst_24 [1] : vector<32x152xf32> to vector<32xf32>
    %37 = vector.shape_cast %36 : vector<32xf32> to vector<32x1xf32>
    %c0_25 = arith.constant 0 : index
    %c0_26 = arith.constant 0 : index
    %c0_27 = arith.constant 0 : index
    %38 = vector.load %arg6[%c0_25, %c0_26, %c0_27] : memref<1x32x1xf32, #tpu.memory_space<vmem>>, vector<1x32x1xf32>
    %39 = vector.shape_cast %38 : vector<1x32x1xf32> to vector<32x1xf32>
    %40 = vector.shape_cast %37 : vector<32x1xf32> to vector<1x32x1xf32>
    tpu.vector_store %arg6[%c0_25, %c0_26, %c0_27], %40 {strides = array<i32>} : memref<1x32x1xf32, #tpu.memory_space<vmem>>, vector<1x32x1xf32>,
    return
  }
  func.func @transform_0(%arg0: i32) -> (i32, i32, i32) {
    %c0_i32 = arith.constant 0 : i32
    %c0_i32_0 = arith.constant 0 : i32
    %c0_i32_1 = arith.constant 0 : i32
    return %arg0, %c0_i32, %c0_i32_0 : i32, i32, i32
  }
  func.func @transform_1(%arg0: i32) -> (i32, i32, i32) {
    %c0_i32 = arith.constant 0 : i32
    %c0_i32_0 = arith.constant 0 : i32
    %c0_i32_1 = arith.constant 0 : i32
    %c0_i32_2 = arith.constant 0 : i32
    return %c0_i32, %c0_i32_0, %c0_i32_1 : i32, i32, i32
  }
  func.func @transform_2(%arg0: i32) -> (i32, i32) {
    %c0_i32 = arith.constant 0 : i32
    %c0_i32_0 = arith.constant 0 : i32
    %c0_i32_1 = arith.constant 0 : i32
    return %c0_i32, %c0_i32_0 : i32, i32
  }
  func.func @transform_3(%arg0: i32) -> (i32, i32, i32) {
    %c0_i32 = arith.constant 0 : i32
    %c0_i32_0 = arith.constant 0 : i32
    %c0_i32_1 = arith.constant 0 : i32
    return %arg0, %c0_i32, %c0_i32_0 : i32, i32, i32
  }
  func.func @transform_4(%arg0: i32) -> (i32, i32, i32) {
    %c0_i32 = arith.constant 0 : i32
    %c0_i32_0 = arith.constant 0 : i32
    %c0_i32_1 = arith.constant 0 : i32
    return %arg0, %c0_i32, %c0_i32_0 : i32, i32, i32
  }
  func.func @transform_5(%arg0: i32) -> (i32, i32, i32) {
    %c0_i32 = arith.constant 0 : i32
    %c0_i32_0 = arith.constant 0 : i32
    %c0_i32_1 = arith.constant 0 : i32
    return %arg0, %c0_i32, %c0_i32_0 : i32, i32, i32
  }
}

module attributes {stable_mosaic.version = 11 : i64} {
  func.func @_apply_kernel(%arg0: i32, %arg1: memref<1x16x162xf32, #tpu.memory_space<vmem>>, %arg2: memref<4x32x16xf32, #tpu.memory_space<vmem>>, %arg3: memref<32x1xf32, #tpu.memory_space<vmem>>, %arg4: memref<32x1xf32, #tpu.memory_space<vmem>>, %arg5: memref<32x1xf32, #tpu.memory_space<vmem>>, %arg6: memref<1x8x162xf32, #tpu.memory_space<vmem>>) attributes {dimension_semantics = [#tpu.dimension_semantics<parallel>], iteration_bounds = array<i64: 1>, scalar_prefetch = 0 : i64, scratch_operands = 0 : i64, tpu.core_type = #tpu.core_type<tc>, window_params = [{transform_indices = @transform_0, window_bounds = array<i64: 1, 16, 162>}, {pipeline_mode = #tpu.pipeline_mode<synchronous>, transform_indices = @transform_1, window_bounds = array<i64: 4, 32, 16>}, {pipeline_mode = #tpu.pipeline_mode<synchronous>, transform_indices = @transform_2, window_bounds = array<i64: 32, 1>}, {pipeline_mode = #tpu.pipeline_mode<synchronous>, transform_indices = @transform_3, window_bounds = array<i64: 32, 1>}, {pipeline_mode = #tpu.pipeline_mode<synchronous>, transform_indices = @transform_4, window_bounds = array<i64: 32, 1>}, {transform_indices = @transform_5, window_bounds = array<i64: 1, 8, 162>}]} {
    %c0 = arith.constant 0 : index
    %c0_0 = arith.constant 0 : index
    %c0_1 = arith.constant 0 : index
    %0 = vector.load %arg1[%c0, %c0_0, %c0_1] : memref<1x16x162xf32, #tpu.memory_space<vmem>>, vector<1x16x162xf32>
    %1 = vector.shape_cast %0 : vector<1x16x162xf32> to vector<16x162xf32>
    %c0_2 = arith.constant 0 : index
    %c0_3 = arith.constant 0 : index
    %c0_4 = arith.constant 0 : index
    %2 = vector.load %arg2[%c0_2, %c0_3, %c0_4] : memref<4x32x16xf32, #tpu.memory_space<vmem>>, vector<1x32x16xf32>
    %3 = vector.shape_cast %2 : vector<1x32x16xf32> to vector<32x16xf32>
    %4 = vector.extract_strided_slice %1 {offsets = [0, 0], sizes = [16, 152], strides = [1, 1]} : vector<16x162xf32> to vector<16x152xf32>
    %cst = arith.constant dense<0.000000e+00> : vector<32x152xf32>
    %5 = tpu.matmul %3, %4, %cst {dimension_numbers = #tpu.dot_dimension_numbers<[1], [0], [0], [1], [0, 0, 1, 1], [], []>} : vector<32x16xf32>, vector<16x152xf32>, vector<32x152xf32> -> vector<32x152xf32>
    %c1 = arith.constant 1 : index
    %c0_5 = arith.constant 0 : index
    %c0_6 = arith.constant 0 : index
    %6 = vector.load %arg2[%c1, %c0_5, %c0_6] : memref<4x32x16xf32, #tpu.memory_space<vmem>>, vector<1x32x16xf32>
    %7 = vector.shape_cast %6 : vector<1x32x16xf32> to vector<32x16xf32>
    %8 = vector.extract_strided_slice %1 {offsets = [0, 1], sizes = [16, 152], strides = [1, 1]} : vector<16x162xf32> to vector<16x152xf32>
    %cst_7 = arith.constant dense<0.000000e+00> : vector<32x152xf32>
    %9 = tpu.matmul %7, %8, %cst_7 {dimension_numbers = #tpu.dot_dimension_numbers<[1], [0], [0], [1], [0, 0, 1, 1], [], []>} : vector<32x16xf32>, vector<16x152xf32>, vector<32x152xf32> -> vector<32x152xf32>
    %10 = arith.addf %5, %9 : vector<32x152xf32>
    %c2 = arith.constant 2 : index
    %c0_8 = arith.constant 0 : index
    %c0_9 = arith.constant 0 : index
    %11 = vector.load %arg2[%c2, %c0_8, %c0_9] : memref<4x32x16xf32, #tpu.memory_space<vmem>>, vector<1x32x16xf32>
    %12 = vector.shape_cast %11 : vector<1x32x16xf32> to vector<32x16xf32>
    %13 = vector.extract_strided_slice %1 {offsets = [0, 9], sizes = [16, 152], strides = [1, 1]} : vector<16x162xf32> to vector<16x152xf32>
    %cst_10 = arith.constant dense<0.000000e+00> : vector<32x152xf32>
    %14 = tpu.matmul %12, %13, %cst_10 {dimension_numbers = #tpu.dot_dimension_numbers<[1], [0], [0], [1], [0, 0, 1, 1], [], []>} : vector<32x16xf32>, vector<16x152xf32>, vector<32x152xf32> -> vector<32x152xf32>
    %15 = arith.addf %10, %14 : vector<32x152xf32>
    %c3 = arith.constant 3 : index
    %c0_11 = arith.constant 0 : index
    %c0_12 = arith.constant 0 : index
    %16 = vector.load %arg2[%c3, %c0_11, %c0_12] : memref<4x32x16xf32, #tpu.memory_space<vmem>>, vector<1x32x16xf32>
    %17 = vector.shape_cast %16 : vector<1x32x16xf32> to vector<32x16xf32>
    %18 = vector.extract_strided_slice %1 {offsets = [0, 10], sizes = [16, 152], strides = [1, 1]} : vector<16x162xf32> to vector<16x152xf32>
    %cst_13 = arith.constant dense<0.000000e+00> : vector<32x152xf32>
    %19 = tpu.matmul %17, %18, %cst_13 {dimension_numbers = #tpu.dot_dimension_numbers<[1], [0], [0], [1], [0, 0, 1, 1], [], []>} : vector<32x16xf32>, vector<16x152xf32>, vector<32x152xf32> -> vector<32x152xf32>
    %20 = arith.addf %15, %19 : vector<32x152xf32>
    %c0_14 = arith.constant 0 : index
    %c0_15 = arith.constant 0 : index
    %21 = vector.load %arg3[%c0_14, %c0_15] : memref<32x1xf32, #tpu.memory_space<vmem>>, vector<32x1xf32>
    %22 = vector.broadcast %21 : vector<32x1xf32> to vector<32x152xf32>
    %23 = arith.addf %20, %22 : vector<32x152xf32>
    %cst_16 = arith.constant 0.000000e+00 : f32
    %24 = vector.broadcast %cst_16 : f32 to vector<32x152xf32>
    %25 = arith.maximumf %23, %24 : vector<32x152xf32>
    %c0_17 = arith.constant 0 : index
    %c0_18 = arith.constant 0 : index
    %26 = vector.load %arg4[%c0_17, %c0_18] : memref<32x1xf32, #tpu.memory_space<vmem>>, vector<32x1xf32>
    %27 = vector.broadcast %26 : vector<32x1xf32> to vector<32x152xf32>
    %28 = arith.mulf %25, %27 : vector<32x152xf32>
    %c0_19 = arith.constant 0 : index
    %c0_20 = arith.constant 0 : index
    %29 = vector.load %arg5[%c0_19, %c0_20] : memref<32x1xf32, #tpu.memory_space<vmem>>, vector<32x1xf32>
    %30 = vector.broadcast %29 : vector<32x1xf32> to vector<32x152xf32>
    %31 = arith.addf %28, %30 : vector<32x152xf32>
    %32 = vector.extract_strided_slice %31 {offsets = [0, 0], sizes = [8, 152], strides = [1, 1]} : vector<32x152xf32> to vector<8x152xf32>
    %33 = vector.extract_strided_slice %31 {offsets = [8, 0], sizes = [8, 152], strides = [1, 1]} : vector<32x152xf32> to vector<8x152xf32>
    %34 = arith.maximumf %32, %33 : vector<8x152xf32>
    %35 = vector.extract_strided_slice %31 {offsets = [16, 0], sizes = [8, 152], strides = [1, 1]} : vector<32x152xf32> to vector<8x152xf32>
    %36 = vector.extract_strided_slice %31 {offsets = [24, 0], sizes = [8, 152], strides = [1, 1]} : vector<32x152xf32> to vector<8x152xf32>
    %37 = arith.maximumf %35, %36 : vector<8x152xf32>
    %38 = arith.maximumf %34, %37 : vector<8x152xf32>
    %cst_21 = arith.constant 0.000000e+00 : f32
    %39 = vector.broadcast %cst_21 : f32 to vector<8x10xf32>
    %c0_22 = arith.constant 0 : index
    %c0_23 = arith.constant 0 : index
    %c152 = arith.constant 152 : index
    %40 = vector.load %arg6[%c0_22, %c0_23, %c152] : memref<1x8x162xf32, #tpu.memory_space<vmem>>, vector<1x8x10xf32>
    %41 = vector.shape_cast %40 : vector<1x8x10xf32> to vector<8x10xf32>
    %42 = vector.shape_cast %39 : vector<8x10xf32> to vector<1x8x10xf32>
    tpu.vector_store %arg6[%c0_22, %c0_23, %c152], %42 {strides = array<i32>} : memref<1x8x162xf32, #tpu.memory_space<vmem>>, vector<1x8x10xf32>,
    %c0_24 = arith.constant 0 : index
    %c0_25 = arith.constant 0 : index
    %c0_26 = arith.constant 0 : index
    %43 = vector.load %arg6[%c0_24, %c0_25, %c0_26] : memref<1x8x162xf32, #tpu.memory_space<vmem>>, vector<1x8x152xf32>
    %44 = vector.shape_cast %43 : vector<1x8x152xf32> to vector<8x152xf32>
    %45 = vector.shape_cast %38 : vector<8x152xf32> to vector<1x8x152xf32>
    tpu.vector_store %arg6[%c0_24, %c0_25, %c0_26], %45 {strides = array<i32>} : memref<1x8x162xf32, #tpu.memory_space<vmem>>, vector<1x8x152xf32>,
    return
  }
  func.func @transform_0(%arg0: i32) -> (i32, i32, i32) {
    %c0_i32 = arith.constant 0 : i32
    %c0_i32_0 = arith.constant 0 : i32
    %c0_i32_1 = arith.constant 0 : i32
    return %arg0, %c0_i32, %c0_i32_0 : i32, i32, i32
  }
  func.func @transform_1(%arg0: i32) -> (i32, i32, i32) {
    %c0_i32 = arith.constant 0 : i32
    %c0_i32_0 = arith.constant 0 : i32
    %c0_i32_1 = arith.constant 0 : i32
    %c0_i32_2 = arith.constant 0 : i32
    return %c0_i32, %c0_i32_0, %c0_i32_1 : i32, i32, i32
  }
  func.func @transform_2(%arg0: i32) -> (i32, i32) {
    %c0_i32 = arith.constant 0 : i32
    %c0_i32_0 = arith.constant 0 : i32
    %c0_i32_1 = arith.constant 0 : i32
    return %c0_i32, %c0_i32_0 : i32, i32
  }
  func.func @transform_3(%arg0: i32) -> (i32, i32) {
    %c0_i32 = arith.constant 0 : i32
    %c0_i32_0 = arith.constant 0 : i32
    %c0_i32_1 = arith.constant 0 : i32
    return %c0_i32, %c0_i32_0 : i32, i32
  }
  func.func @transform_4(%arg0: i32) -> (i32, i32) {
    %c0_i32 = arith.constant 0 : i32
    %c0_i32_0 = arith.constant 0 : i32
    %c0_i32_1 = arith.constant 0 : i32
    return %c0_i32, %c0_i32_0 : i32, i32
  }
  func.func @transform_5(%arg0: i32) -> (i32, i32, i32) {
    %c0_i32 = arith.constant 0 : i32
    %c0_i32_0 = arith.constant 0 : i32
    %c0_i32_1 = arith.constant 0 : i32
    return %arg0, %c0_i32, %c0_i32_0 : i32, i32, i32
  }
}

</mosaic_0001>

<bundles_post_ra>
// kernel: tile.14
= control target key start
LH: loop header
LB: loop body
LE: loop exit
PB: predicated region body
PF: predicated region fallthrough
CT: control target
= control target key end

     0   :  { %s22_s0 = inlined_call_operand.vmem [shape: f32[8], index: 0, kind: input, shape index: {}]   ;;  %s23_s1 = inlined_call_operand.vmem [shape: f32[4,1,1,8], index: 1, kind: output, shape index: {}]  }
   0x1   :  { %v4_v0 = vld [vmem:[%s22_s0] ss:$0 sm:$0xff] }
   0x2   :  { %5 = vst [vmem:[%s23_s1] sm:$0xf] %v4_v0 }

// kernel: tile.0
= control target key start
LH: loop header
LB: loop body
LE: loop exit
PB: predicated region body
PF: predicated region fallthrough
CT: control target
= control target key end

     0   :  { %s66_s8 = smov 125   ;;  %s67_s9 = smov 123   ;;  %vm7_vm0 = vcmask 7168   ;;  %s117_s0 = inlined_call_operand.vmem [shape: f32[4,1,1,8], index: 0, kind: input, shape index: {}]   ;;  %s118_s1 = inlined_call_operand.vmem [shape: f32[32,1], index: 1, kind: output, shape index: {}]  }
   0x1   :  { %v4_v0 = vld [vmem:[%s117_s0] sm:$0xf]  ;;  %s65_s0 = smov 127   ;;  %s68_s10 = smov 126  }
   0x2   :  { %5 = vst [vmem:[#allocation0] sm:$0xf] %v4_v0  ;;  %s69_s11 = smov 124   ;;  %s70_s12 = smov 122  }
   0x3   :  { %s71_s13 = smov 121  }
   0x9   :  { %v9_v1 = vld [vmem:[#allocation0] sm:$0xf]  }
   0xa   :  { %v21_v2 = vld [vmem:[#allocation0] sm:$0xf]   ;;  %10 = vrot.lane.b32.xlu0 %v9_v1, %s65_s0 }
   0xb   :  { %22 = vrot.lane.b32.xlu1 %v21_v2, %s66_s8  ;;  %v33_v3 = vld [vmem:[#allocation0] sm:$0xf]  }
   0xc   :  { %34 = vrot.lane.b32.xlu2 %v33_v3, %s67_s9  ;;  %v15_v4 = vld [vmem:[#allocation0] sm:$0xf]  }
   0xd   :  { %v27_v5 = vld [vmem:[#allocation0] sm:$0xf]  }
   0xe   :  { %v39_v6 = vld [vmem:[#allocation0] sm:$0xf]  }
   0xf   :  { %v45_v7 = vld [vmem:[#allocation0] sm:$0xf]  }
  0x10   :  { %v6_v8 = vld [vmem:[#allocation0] sm:$0xf]  }
  0x11   :  { %8 = vst.msk [vmem:[%s118_s1] ss:$8 sm:$0xf] %vm7_vm0, %v6_v8  }
  0x12   :  { %16 = vrot.lane.b32.xlu0 %v15_v4, %s68_s10 }
  0x13   :  { %28 = vrot.lane.b32.xlu1 %v27_v5, %s69_s11 }
  0x14   :  { %40 = vrot.lane.b32.xlu2 %v39_v6, %s70_s12 }
  0x1a   :  { %46 = vrot.lane.b32.xlu0 %v45_v7, %s71_s13 }
  0x66   :  { %v35_v9 = vpop.permute.xlu2 %34  }
  0x67   :  { %55 = vst.msk [vmem:[%s118_s1 + $0x5] ss:$8 sm:$0xf] %vm7_vm0, %v35_v9  }
  0x6e   :  { %v41_v10 = vpop.permute.xlu2 %40  }
  0x6f   :  { %56 = vst.msk [vmem:[%s118_s1 + $0x6] ss:$8 sm:$0xf] %vm7_vm0, %v41_v10  }
  0x7c   :  { %v11_v11 = vpop.permute.xlu0 %10  }
  0x7d   :  { %v23_v12 = vpop.permute.xlu1 %22   ;;  %51 = vst.msk [vmem:[%s118_s1 + $0x1] ss:$8 sm:$0xf] %vm7_vm0, %v11_v11  }
  0x7e   :  { %53 = vst.msk [vmem:[%s118_s1 + $0x3] ss:$8 sm:$0xf] %vm7_vm0, %v23_v12  }
  0x84   :  { %v17_v13 = vpop.permute.xlu0 %16  }
  0x85   :  { %v29_v14 = vpop.permute.xlu1 %28   ;;  %52 = vst.msk [vmem:[%s118_s1 + $0x2] ss:$8 sm:$0xf] %vm7_vm0, %v17_v13  }
  0x86   :  { %54 = vst.msk [vmem:[%s118_s1 + $0x4] ss:$8 sm:$0xf] %vm7_vm0, %v29_v14  }
  0x8c   :  { %v47_v15 = vpop.permute.xlu0 %46  }
  0x8d   :  { %57 = vst.msk [vmem:[%s118_s1 + $0x7] ss:$8 sm:$0xf] %vm7_vm0, %v47_v15  }

// kernel: conv_block_forward.3
= control target key start
LH: loop header
LB: loop body
LE: loop exit
PB: predicated region body
PF: predicated region fallthrough
CT: control target
= control target key end

     0   :  { %s590_s22 = smov 127   ;;  %s591_s23 = smov 118   ;;  %vm52_vm0 = vcmask 130048   ;;  %vm45_vm1 = vcmask 1039360   ;;  %vm304_vm2 = vcmask 965632   ;;  %v593_v22 = vmov 0   ;;  %s768_s0 = inlined_call_operand.vmem [shape: f32[1,16,162], index: 0, kind: input, shape index: {}]   ;;  %s769_s1 = inlined_call_operand.vmem [shape: f32[4,32,16], index: 1, kind: input, shape index: {}]   ;;  %s770_s2 = inlined_call_operand.vmem [shape: f32[32,1], index: 2, kind: input, shape index: {}]   ;;  %s771_s3 = inlined_call_operand.vmem [shape: f32[32,1], index: 3, kind: input, shape index: {}]   ;;  %s772_s4 = inlined_call_operand.vmem [shape: f32[32,1], index: 4, kind: input, shape index: {}]   ;;  %s773_s5 = inlined_call_operand.vmem [shape: f32[1,8,162], index: 5, kind: output, shape index: {}]  }
   0x1   :  { %v22_v0 = vld [vmem:[%s768_s0 + $0x10] sm:$0xff]  ;;  %v23_v1 = vld [vmem:[%s768_s0 + $0x18] sm:$0xff]  ;;  %v20_v3 = vld [vmem:[%s768_s0] sm:$0xff]  ;;  %s592_s28 = smov 119   ;;  %588 = vset.pattern.permute.xlu1 %v593_v22  ;;  %587 = vset.pattern.permute.xlu0 %v593_v22  ;;  %vm206_vm3 = vcmask 973824   ;;  %vm499_vm4 = vcmask 277696  }
   0x2   :  { %v557_v2 = vpack.i.bf16 %v23_v1, %v22_v0  ;;  %149 = vmatpush.msra.mxu2 %v22_v0  ;;  %178 = vmatpush.msra.mxu3 %v23_v1  ;;  %v21_v4 = vld [vmem:[%s768_s0 + $0x8] sm:$0xff]  ;;  %v24_v6 = vld [vmem:[%s769_s1] sm:$0xff]  ;;  %v26_v8 = vld [vmem:[%s769_s1 + $0x10] sm:$0xff]  ;;  %vm502_vm5 = vcmask 195584  }
   0x3   :  { %v562_v5 = vpack.i.bf16 %v21_v4, %v20_v3  ;;  %v25_v7 = vld [vmem:[%s769_s1 + $0x8] sm:$0xff]  ;;  %v27_v10 = vld [vmem:[%s769_s1 + $0x18] sm:$0xff]  ;;  %v389_v21 = vld [vmem:[%s770_s2] sm:$0xff]  ;;  %589 = vset.pattern.permute.xlu2 %v593_v22 }
   0x4   :  { %558 = vrot.lane.b32.xlu0 %v557_v2, %s590_s22  ;;  %568 = vrot.lane.b32.xlu1 %v557_v2, %s591_s23  ;;  %v390_v20 = vld [vmem:[%s770_s2 + $0x8] sm:$0xff]  ;;  %v508_v31 = vld [vmem:[%s769_s1 + $0x20] sm:$0xff] }
   0x5   :  { %578 = vrot.lane.b32.xlu2 %v557_v2, %s592_s28  ;;  %150 = vmatpush.msra.mxu2 %v20_v3  ;;  %v540_v37 = vld [vmem:[%s769_s1 + $0x60] sm:$0xff]  ;;  %v392_v39 = vld [vmem:[%s770_s2 + $0x18] sm:$0xff]  ;;  %v430_v40 = vld [vmem:[%s771_s3 + $0x8] sm:$0xff] }
   0x6   :  { %179 = vmatpush.msra.mxu3 %v21_v4  ;;  %520 = vmatmul.msk.f32.vlgmr.msra.gmra.mxu2 %vm52_vm0, %v24_v6  ;;  %v509_v41 = vld [vmem:[%s769_s1 + $0x28] sm:$0xff]  ;;  %v431_v43 = vld [vmem:[%s771_s3 + $0x10] sm:$0xff]  ;;  %v461_v44 = vld [vmem:[%s772_s4] sm:$0xff] }
   0x7   :  { %524 = vmatmul.msk.f32.vlgmr.msra.gmra.mxu3 %vm52_vm0, %v24_v6  ;;  %v541_v42 = vld [vmem:[%s769_s1 + $0x68] sm:$0xff]  ;;  %v510_v45 = vld [vmem:[%s769_s1 + $0x30] sm:$0xff]  ;;  %v464_v49 = vld [vmem:[%s772_s4 + $0x18] sm:$0xff] }
   0x8   :  { %v542_v46 = vld [vmem:[%s769_s1 + $0x70] sm:$0xff]  ;;  %v462_v48 = vld [vmem:[%s772_s4 + $0x8] sm:$0xff]  ;;  %v511_v50 = vld [vmem:[%s769_s1 + $0x38] sm:$0xff] }
   0x9   :  { %v391_v47 = vld [vmem:[%s770_s2 + $0x10] sm:$0xff]  ;;  %v543_v51 = vld [vmem:[%s769_s1 + $0x78] sm:$0xff]  ;;  %v429_v52 = vld [vmem:[%s771_s3] sm:$0xff] }
   0xa   :  { %v528_v53 = vld [vmem:[%s769_s1 + $0x40] sm:$0xff]  ;;  %v432_v54 = vld [vmem:[%s771_s3 + $0x18] sm:$0xff]  ;;  %v529_v55 = vld [vmem:[%s769_s1 + $0x48] sm:$0xff] }
   0xb   :  { %v463_v56 = vld [vmem:[%s772_s4 + $0x10] sm:$0xff]  ;;  %v531_v58 = vld [vmem:[%s769_s1 + $0x58] sm:$0xff] }
   0xc   :  { %563 = vrot.lane.b32.xlu0 %v562_v5, %s590_s22  ;;  %573 = vrot.lane.b32.xlu1 %v562_v5, %s591_s23  ;;  %v530_v57 = vld [vmem:[%s769_s1 + $0x50] sm:$0xff] }
   0xd   :  { %583 = vrot.lane.b32.xlu2 %v562_v5, %s592_s28 }
   0xe   :  { %521 = vmatmul.msk.f32.gmra.mxu2 %vm52_vm0, %v25_v7 }
   0xf   :  { %525 = vmatmul.msk.f32.gmra.mxu3 %vm52_vm0, %v25_v7 }
  0x14   :  { %400 = vperm.xlu1 %588, %v390_v20   ;;  %395 = vperm.xlu0 %587, %v389_v21   ;;  %v594_v21 = vmov 0.0  }
  0x15   :  { %405 = vperm.xlu2 %589, %v391_v47   ;;  %500 = vst.msk [vmem:[%s773_s5 + $0x8] sm:$0xff] %vm499_vm4, %v594_v21 }
  0x16   :  { %522 = vmatmul.msk.f32.gmra.mxu2 %vm52_vm0, %v26_v8 }
  0x17   :  { %526 = vmatmul.msk.f32.gmra.mxu3 %vm52_vm0, %v26_v8 }
  0x1c   :  { %410 = vperm.xlu1 %588, %v392_v39   ;;  %440 = vperm.xlu0 %587, %v430_v40  }
  0x1d   :  { %435 = vperm.xlu2 %589, %v429_v52  }
  0x1e   :  { %523 = vmatmul.msk.f32.gmra.mxu2 %vm52_vm0, %v27_v10 }
  0x1f   :  { %527 = vmatmul.msk.f32.gmra.mxu3 %vm52_vm0, %v27_v10 }
  0x24   :  { %445 = vperm.xlu1 %588, %v431_v43   ;;  %467 = vperm.xlu0 %587, %v461_v44  }
  0x25   :  { %450 = vperm.xlu2 %589, %v432_v54  }
  0x2c   :  { %472 = vperm.xlu1 %588, %v462_v48   ;;  %482 = vperm.xlu0 %587, %v464_v49  }
  0x2d   :  { %477 = vperm.xlu2 %589, %v463_v56  }
  0x5f   :  { %v579_v9 = vpop.permute.xlu2 %578 }
  0x60   :  { %v580_v23 = vunpack.i.l.bf16 %v579_v9  ;;  %v581_v24 = vunpack.i.h.bf16 %v579_v9 }
  0x62   :  { %v208_v35 = vsel %vm206_vm3, %v580_v23, %v581_v24 }
  0x67   :  { %v584_v19 = vpop.permute.xlu2 %583 }
  0x68   :  { %v585_v27 = vunpack.i.l.bf16 %v584_v19  ;;  %v586_v28 = vunpack.i.h.bf16 %v584_v19 }
  0x6a   :  { %v207_v38 = vsel %vm206_vm3, %v585_v27, %v586_v28 }
  0x76   :  { %v559_v11 = vpop.permute.xlu0 %558  ;;  %v569_v12 = vpop.permute.xlu1 %568 }
  0x77   :  { %v560_v13 = vunpack.i.l.bf16 %v559_v11  ;;  %v561_v14 = vunpack.i.h.bf16 %v559_v11  ;;  %v570_v15 = vunpack.i.l.bf16 %v569_v12  ;;  %v571_v16 = vunpack.i.h.bf16 %v569_v12 }
  0x79   :  { %108 = vmatpush.msra.mxu1 %v561_v14  ;;  %v47_v17 = vsel %vm45_vm1, %v560_v13, %v561_v14  ;;  %366 = vmatpush.msrb.mxu3 %v571_v16  ;;  %v306_v18 = vsel %vm304_vm2, %v570_v15, %v571_v16  ;;  %v406_v16 = vpop.permute.xlu2 %405 }
  0x7a   :  { %79 = vmatpush.msra.mxu0 %v47_v17  ;;  %337 = vmatpush.msrb.mxu2 %v306_v18 }
  0x7e   :  { %v564_v25 = vpop.permute.xlu0 %563  ;;  %v574_v26 = vpop.permute.xlu1 %573 }
  0x7f   :  { %v565_v29 = vunpack.i.l.bf16 %v564_v25  ;;  %v566_v30 = vunpack.i.h.bf16 %v564_v25  ;;  %v575_v32 = vunpack.i.l.bf16 %v574_v26  ;;  %v576_v33 = vunpack.i.h.bf16 %v574_v26 }
  0x81   :  { %109 = vmatpush.msra.mxu1 %v566_v30  ;;  %v46_v34 = vsel %vm45_vm1, %v565_v29, %v566_v30  ;;  %367 = vmatpush.msrb.mxu3 %v576_v33  ;;  %v305_v36 = vsel %vm304_vm2, %v575_v32, %v576_v33  ;;  %v436_v27 = vpop.permute.xlu2 %435 }
  0x82   :  { %80 = vmatpush.msra.mxu0 %v46_v34  ;;  %516 = vmatmul.msk.f32.vlgmr.msra.gmra.mxu1 %vm52_vm0, %v508_v31 }
  0x83   :  { %268 = vmatpush.msrb.mxu1 %v581_v24  ;;  %512 = vmatmul.msk.f32.vlgmr.msra.gmra.mxu0 %vm52_vm0, %v508_v31 }
  0x84   :  { %239 = vmatpush.msrb.mxu0 %v208_v35  ;;  %338 = vmatpush.msrb.mxu2 %v305_v36 }
  0x85   :  { %269 = vmatpush.msrb.mxu1 %v586_v28  ;;  %548 = vmatmul.msk.f32.vlgmr.msrb.gmra.mxu3 %vm52_vm0, %v540_v37 }
  0x86   :  { %240 = vmatpush.msrb.mxu0 %v207_v38  ;;  %544 = vmatmul.msk.f32.vlgmr.msrb.gmra.mxu2 %vm52_vm0, %v540_v37  ;;  %v401_v15 = vpop.permute.xlu1 %400  ;;  %v396_v17 = vpop.permute.xlu0 %395 }
  0x89   :  { %v152_v60 = vpop.f32.mrf.mxu2 }
  0x8a   :  { %517 = vmatmul.msk.f32.gmra.mxu1 %vm52_vm0, %v509_v41  ;;  %v181_v59 = vpop.f32.mrf.mxu3 }
  0x8b   :  { %513 = vmatmul.msk.f32.gmra.mxu0 %vm52_vm0, %v509_v41 }
  0x8d   :  { %549 = vmatmul.msk.f32.gmra.mxu3 %vm52_vm0, %v541_v42 }
  0x8e   :  { %545 = vmatmul.msk.f32.gmra.mxu2 %vm52_vm0, %v541_v42  ;;  %v411_v25 = vpop.permute.xlu1 %410  ;;  %v441_v28 = vpop.permute.xlu0 %440 }
  0x91   :  { %v155_v62 = vpop.f32.mrf.mxu2 }
  0x92   :  { %518 = vmatmul.msk.f32.gmra.mxu1 %vm52_vm0, %v510_v45  ;;  %v184_v61 = vpop.f32.mrf.mxu3 }
  0x93   :  { %514 = vmatmul.msk.f32.gmra.mxu0 %vm52_vm0, %v510_v45 }
  0x95   :  { %550 = vmatmul.msk.f32.gmra.mxu3 %vm52_vm0, %v542_v46 }
  0x96   :  { %546 = vmatmul.msk.f32.gmra.mxu2 %vm52_vm0, %v542_v46  ;;  %v446_v49 = vpop.permute.xlu1 %445  ;;  %v468_v54 = vpop.permute.xlu0 %467 }
  0x99   :  { %v158_v4 = vpop.f32.mrf.mxu2 }
  0x9a   :  { %519 = vmatmul.msk.f32.gmra.mxu1 %vm52_vm0, %v511_v50  ;;  %v187_v1 = vpop.f32.mrf.mxu3 }
  0x9b   :  { %515 = vmatmul.msk.f32.gmra.mxu0 %vm52_vm0, %v511_v50 }
  0x9d   :  { %551 = vmatmul.msk.f32.gmra.mxu3 %vm52_vm0, %v543_v51 }
  0x9e   :  { %547 = vmatmul.msk.f32.gmra.mxu2 %vm52_vm0, %v543_v51 }
  0xa1   :  { %v161_v8 = vpop.f32.mrf.mxu2 }
  0xa2   :  { %536 = vmatmul.msk.f32.vlgmr.msrb.gmra.mxu1 %vm52_vm0, %v528_v53  ;;  %v190_v6 = vpop.f32.mrf.mxu3 }
  0xa3   :  { %532 = vmatmul.msk.f32.vlgmr.msrb.gmra.mxu0 %vm52_vm0, %v528_v53  ;;  %v451_v53 = vpop.permute.xlu2 %450 }
  0xaa   :  { %537 = vmatmul.msk.f32.gmra.mxu1 %vm52_vm0, %v529_v55 }
  0xab   :  { %533 = vmatmul.msk.f32.gmra.mxu0 %vm52_vm0, %v529_v55 }
  0xb2   :  { %538 = vmatmul.msk.f32.gmra.mxu1 %vm52_vm0, %v530_v57 }
  0xb3   :  { %534 = vmatmul.msk.f32.gmra.mxu0 %vm52_vm0, %v530_v57 }
  0xba   :  { %539 = vmatmul.msk.f32.gmra.mxu1 %vm52_vm0, %v531_v58 }
  0xbb   :  { %535 = vmatmul.msk.f32.gmra.mxu0 %vm52_vm0, %v531_v58 }
  0xff   :  { %v111_v63 = vpop.f32.mrf.mxu1 }
 0x100   :  { %v82_v0 = vpop.f32.mrf.mxu0  ;;  %v182_v26 = vadd.f32 %v181_v59, %v111_v63 }
 0x101   :  { %v153_v30 = vadd.f32 %v152_v60, %v82_v0 }
 0x107   :  { %v114_v2 = vpop.f32.mrf.mxu1 }
 0x108   :  { %v85_v3 = vpop.f32.mrf.mxu0  ;;  %v369_v11 = vpop.f32.mrf.mxu3  ;;  %v185_v23 = vadd.f32 %v184_v61, %v114_v2 }
 0x109   :  { %v340_v12 = vpop.f32.mrf.mxu2  ;;  %v156_v24 = vadd.f32 %v155_v62, %v85_v3 }
 0x10f   :  { %v117_v5 = vpop.f32.mrf.mxu1 }
 0x110   :  { %v88_v7 = vpop.f32.mrf.mxu0  ;;  %v372_v18 = vpop.f32.mrf.mxu3  ;;  %v188_v33 = vadd.f32 %v187_v1, %v117_v5 }
 0x111   :  { %v343_v19 = vpop.f32.mrf.mxu2  ;;  %v159_v36 = vadd.f32 %v158_v4, %v88_v7 }
 0x117   :  { %v120_v9 = vpop.f32.mrf.mxu1 }
 0x118   :  { %v91_v10 = vpop.f32.mrf.mxu0  ;;  %v375_v32 = vpop.f32.mrf.mxu3  ;;  %v191_v51 = vadd.f32 %v190_v6, %v120_v9 }
 0x119   :  { %v346_v35 = vpop.f32.mrf.mxu2  ;;  %v162_v56 = vadd.f32 %v161_v8, %v91_v10 }
 0x11f   :  { %v271_v13 = vpop.f32.mrf.mxu1 }
 0x120   :  { %v242_v14 = vpop.f32.mrf.mxu0  ;;  %v284_v34 = vadd.f32 %v271_v13, %v182_v26  ;;  %v378_v60 = vpop.f32.mrf.mxu3 }
 0x121   :  { %v283_v37 = vadd.f32 %v242_v14, %v153_v30  ;;  %v349_v0 = vpop.f32.mrf.mxu2 }
 0x122   :  { %v382_v44 = vadd.f32 %v369_v11, %v284_v34 }
 0x123   :  { %v381_v46 = vadd.f32 %v340_v12, %v283_v37 }
 0x124   :  { %v414_v52 = vadd.f32 %v396_v17, %v382_v44 }
 0x125   :  { %v413_v57 = vadd.f32 %v396_v17, %v381_v46  ;;  %v473_v17 = vpop.permute.xlu1 %472 }
 0x126   :  { %v422_v3 = vmax.f32 %v414_v52, 0.0 }
 0x127   :  { %v274_v20 = vpop.f32.mrf.mxu1  ;;  %v421_v7 = vmax.f32 %v413_v57, 0.0 }
 0x128   :  { %v245_v22 = vpop.f32.mrf.mxu0  ;;  %v286_v29 = vadd.f32 %v274_v20, %v185_v23  ;;  %v454_v10 = vmul.f32 %v436_v27, %v422_v3  ;;  %v483_v23 = vpop.permute.xlu0 %482 }
 0x129   :  { %v285_v31 = vadd.f32 %v245_v22, %v156_v24  ;;  %v478_v22 = vpop.permute.xlu2 %477 }
 0x12a   :  { %v384_v39 = vadd.f32 %v372_v18, %v286_v29  ;;  %v486_v29 = vadd.f32 %v468_v54, %v454_v10 }
 0x12b   :  { %v383_v42 = vadd.f32 %v343_v19, %v285_v31 }
 0x12c   :  { %v416_v48 = vadd.f32 %v401_v15, %v384_v39 }
 0x12d   :  { %v415_v50 = vadd.f32 %v401_v15, %v383_v42 }
 0x12e   :  { %v424_v61 = vmax.f32 %v416_v48, 0.0 }
 0x12f   :  { %v277_v38 = vpop.f32.mrf.mxu1  ;;  %v423_v1 = vmax.f32 %v415_v50, 0.0 }
 0x130   :  { %v288_v40 = vadd.f32 %v277_v38, %v188_v33  ;;  %v248_v41 = vpop.f32.mrf.mxu0  ;;  %v456_v11 = vmul.f32 %v441_v28, %v424_v61 }
 0x131   :  { %v287_v43 = vadd.f32 %v248_v41, %v159_v36  ;;  %v455_v13 = vmul.f32 %v441_v28, %v423_v1 }
 0x132   :  { %v386_v45 = vadd.f32 %v375_v32, %v288_v40  ;;  %v488_v20 = vadd.f32 %v473_v17, %v456_v11 }
 0x133   :  { %v385_v47 = vadd.f32 %v346_v35, %v287_v43  ;;  %v487_v24 = vadd.f32 %v473_v17, %v455_v13 }
 0x134   :  { %v418_v55 = vadd.f32 %v406_v16, %v386_v45 }
 0x135   :  { %v417_v58 = vadd.f32 %v406_v16, %v385_v47  ;;  %v453_v16 = vmul.f32 %v436_v27, %v421_v7 }
 0x136   :  { %v426_v4 = vmax.f32 %v418_v55, 0.0 }
 0x137   :  { %v280_v59 = vpop.f32.mrf.mxu1  ;;  %v425_v6 = vmax.f32 %v417_v58, 0.0  ;;  %v485_v32 = vadd.f32 %v468_v54, %v453_v16 }
 0x138   :  { %v290_v62 = vadd.f32 %v280_v59, %v191_v51  ;;  %v251_v63 = vpop.f32.mrf.mxu0  ;;  %v458_v14 = vmul.f32 %v446_v49, %v426_v4 }
 0x139   :  { %v289_v2 = vadd.f32 %v251_v63, %v162_v56  ;;  %v457_v18 = vmul.f32 %v446_v49, %v425_v6  ;;  %v493_v35 = vmax.f32 %v485_v32, %v487_v24 }
 0x13a   :  { %v388_v5 = vadd.f32 %v378_v60, %v290_v62  ;;  %v490_v30 = vadd.f32 %v478_v22, %v458_v14 }
 0x13b   :  { %v387_v9 = vadd.f32 %v349_v0, %v289_v2  ;;  %v489_v33 = vadd.f32 %v478_v22, %v457_v18 }
 0x13c   :  { %v420_v12 = vadd.f32 %v411_v25, %v388_v5 }
 0x13d   :  { %v419_v8 = vadd.f32 %v411_v25, %v387_v9  ;;  %v494_v25 = vmax.f32 %v486_v29, %v488_v20 }
 0x13e   :  { %v428_v15 = vmax.f32 %v420_v12, 0.0 }
 0x13f   :  { %v427_v19 = vmax.f32 %v419_v8, 0.0 }
 0x140   :  { %v460_v21 = vmul.f32 %v451_v53, %v428_v15 }
 0x141   :  { %v459_v26 = vmul.f32 %v451_v53, %v427_v19 }
 0x142   :  { %v492_v31 = vadd.f32 %v483_v23, %v460_v21 }
 0x143   :  { %v491_v28 = vadd.f32 %v483_v23, %v459_v26 }
 0x144   :  { %v496_v34 = vmax.f32 %v490_v30, %v492_v31 }
 0x145   :  { %v495_v36 = vmax.f32 %v489_v33, %v491_v28 }
 0x146   :  { %v498_v27 = vmax.f32 %v494_v25, %v496_v34 }
 0x147   :  { %v497_v37 = vmax.f32 %v493_v35, %v495_v36 }
 0x148   :  { %503 = vst.msk [vmem:[%s773_s5 + $0x8] sm:$0xff] %vm502_vm5, %v498_v27 }
 0x149   :  { %501 = vst [vmem:[%s773_s5] sm:$0xff] %v497_v37 }

// kernel: conv_block_forward.2
= control target key start
LH: loop header
LB: loop body
LE: loop exit
PB: predicated region body
PF: predicated region fallthrough
CT: control target
= control target key end

     0   :  { %s581_s22 = smov 127   ;;  %s582_s23 = smov 118   ;;  %vm51_vm0 = vcmask 130048   ;;  %vm44_vm1 = vcmask 1039360   ;;  %vm303_vm2 = vcmask 965632   ;;  %vm205_vm3 = vcmask 973824   ;;  %s792_s0 = inlined_call_operand.vmem [shape: f32[1,16,162], index: 0, kind: input, shape index: {}]   ;;  %s793_s1 = inlined_call_operand.vmem [shape: f32[4,32,16], index: 1, kind: input, shape index: {}]   ;;  %s794_s2 = inlined_call_operand.vmem [shape: f32[32,1], index: 2, kind: input, shape index: {}]   ;;  %s795_s3 = inlined_call_operand.vmem [shape: f32[1,1,162], index: 3, kind: input, shape index: {}]   ;;  %s796_s4 = inlined_call_operand.vmem [shape: f32[1,32,1], index: 4, kind: output, shape index: {0}]   ;;  %s797_s5 = inlined_call_operand.vmem [shape: f32[1,32,1], index: 5, kind: output, shape index: {1}]  }
   0x1   :  { %v21_v0 = vld [vmem:[%s792_s0 + $0x10] sm:$0xff]  ;;  %v22_v1 = vld [vmem:[%s792_s0 + $0x18] sm:$0xff]  ;;  %v20_v3 = vld [vmem:[%s792_s0 + $0x8] sm:$0xff]  ;;  %s583_s28 = smov 119   ;;  %v584_v39 = vmov 0   ;;  %vm442_vm4 = vcmask 195584  }
   0x2   :  { %v548_v2 = vpack.i.bf16 %v22_v1, %v21_v0  ;;  %177 = vmatpush.msra.mxu3 %v22_v1  ;;  %148 = vmatpush.msra.mxu2 %v21_v0  ;;  %v19_v4 = vld [vmem:[%s792_s0] sm:$0xff]  ;;  %v24_v7 = vld [vmem:[%s793_s1 + $0x8] sm:$0xff]  ;;  %v25_v8 = vld [vmem:[%s793_s1 + $0x10] sm:$0xff]  ;;  %vm459_vm5 = vcmask 7168  }
   0x3   :  { %v553_v5 = vpack.i.bf16 %v20_v3, %v19_v4  ;;  %v23_v6 = vld [vmem:[%s793_s1] sm:$0xff]  ;;  %v26_v10 = vld [vmem:[%s793_s1 + $0x18] sm:$0xff]  ;;  %v501_v36 = vld [vmem:[%s793_s1 + $0x28] sm:$0xff]  ;;  %578 = vset.pattern.permute.xlu0 %v584_v39  ;;  %579 = vset.pattern.permute.xlu1 %v584_v39 }
   0x4   :  { %549 = vrot.lane.b32.xlu0 %v548_v2, %s581_s22  ;;  %559 = vrot.lane.b32.xlu1 %v548_v2, %s582_s23  ;;  %v500_v28 = vld [vmem:[%s793_s1 + $0x20] sm:$0xff]  ;;  %v533_v37 = vld [vmem:[%s793_s1 + $0x68] sm:$0xff] }
   0x5   :  { %569 = vrot.lane.b32.xlu2 %v548_v2, %s583_s28  ;;  %178 = vmatpush.msra.mxu3 %v20_v3  ;;  %v532_v34 = vld [vmem:[%s793_s1 + $0x60] sm:$0xff]  ;;  %v502_v40 = vld [vmem:[%s793_s1 + $0x30] sm:$0xff]  ;;  %v389_v42 = vld [vmem:[%s794_s2 + $0x8] sm:$0xff] }
   0x6   :  { %149 = vmatpush.msra.mxu2 %v19_v4  ;;  %516 = vmatmul.msk.f32.vlgmr.msra.gmra.mxu3 %vm51_vm0, %v23_v6  ;;  %v388_v38 = vld [vmem:[%s794_s2] sm:$0xff]  ;;  %v534_v41 = vld [vmem:[%s793_s1 + $0x70] sm:$0xff]  ;;  %v503_v43 = vld [vmem:[%s793_s1 + $0x38] sm:$0xff] }
   0x7   :  { %512 = vmatmul.msk.f32.vlgmr.msra.gmra.mxu2 %vm51_vm0, %v23_v6  ;;  %580 = vset.pattern.permute.xlu2 %v584_v39  ;;  %v535_v44 = vld [vmem:[%s793_s1 + $0x78] sm:$0xff]  ;;  %v390_v46 = vld [vmem:[%s794_s2 + $0x10] sm:$0xff]  ;;  %v520_v47 = vld [vmem:[%s793_s1 + $0x40] sm:$0xff] }
   0x8   :  { %v391_v45 = vld [vmem:[%s794_s2 + $0x18] sm:$0xff]  ;;  %v521_v48 = vld [vmem:[%s793_s1 + $0x48] sm:$0xff]  ;;  %v522_v49 = vld [vmem:[%s793_s1 + $0x50] sm:$0xff] }
   0x9   :  { %v523_v50 = vld [vmem:[%s793_s1 + $0x58] sm:$0xff] }
   0xc   :  { %554 = vrot.lane.b32.xlu0 %v553_v5, %s581_s22  ;;  %564 = vrot.lane.b32.xlu1 %v553_v5, %s582_s23 }
   0xd   :  { %574 = vrot.lane.b32.xlu2 %v553_v5, %s583_s28 }
   0xe   :  { %517 = vmatmul.msk.f32.gmra.mxu3 %vm51_vm0, %v24_v7 }
   0xf   :  { %513 = vmatmul.msk.f32.gmra.mxu2 %vm51_vm0, %v24_v7 }
  0x14   :  { %394 = vperm.xlu0 %578, %v388_v38   ;;  %399 = vperm.xlu1 %579, %v389_v42  }
  0x15   :  { %404 = vperm.xlu2 %580, %v390_v46  }
  0x16   :  { %518 = vmatmul.msk.f32.gmra.mxu3 %vm51_vm0, %v25_v8 }
  0x17   :  { %514 = vmatmul.msk.f32.gmra.mxu2 %vm51_vm0, %v25_v8 }
  0x1c   :  { %409 = vperm.xlu1 %579, %v391_v45  }
  0x1e   :  { %519 = vmatmul.msk.f32.gmra.mxu3 %vm51_vm0, %v26_v10 }
  0x1f   :  { %515 = vmatmul.msk.f32.gmra.mxu2 %vm51_vm0, %v26_v10 }
  0x5f   :  { %v570_v9 = vpop.permute.xlu2 %569 }
  0x60   :  { %v571_v20 = vunpack.i.l.bf16 %v570_v9  ;;  %v572_v21 = vunpack.i.h.bf16 %v570_v9 }
  0x62   :  { %v207_v32 = vsel %vm205_vm3, %v571_v20, %v572_v21 }
  0x67   :  { %v575_v19 = vpop.permute.xlu2 %574 }
  0x68   :  { %v576_v24 = vunpack.i.l.bf16 %v575_v19  ;;  %v577_v25 = vunpack.i.h.bf16 %v575_v19 }
  0x6a   :  { %v206_v35 = vsel %vm205_vm3, %v576_v24, %v577_v25 }
  0x76   :  { %v550_v11 = vpop.permute.xlu0 %549  ;;  %v560_v12 = vpop.permute.xlu1 %559 }
  0x77   :  { %v551_v13 = vunpack.i.l.bf16 %v550_v11  ;;  %v552_v14 = vunpack.i.h.bf16 %v550_v11  ;;  %v561_v15 = vunpack.i.l.bf16 %v560_v12  ;;  %v562_v16 = vunpack.i.h.bf16 %v560_v12  ;;  %v428_v11 = vld [vmem:[%s795_s3] sm:$0x3] }
  0x78   :  { %v738_v20 = vperm.slane %v428_v11, 0 }
  0x79   :  { %107 = vmatpush.msra.mxu1 %v552_v14  ;;  %v46_v17 = vsel %vm44_vm1, %v551_v13, %v552_v14  ;;  %365 = vmatpush.msrb.mxu3 %v562_v16  ;;  %v305_v18 = vsel %vm303_vm2, %v561_v15, %v562_v16  ;;  %v736_v16 = vperm.slane %v428_v11, 1 }
  0x7a   :  { %78 = vmatpush.msra.mxu0 %v46_v17  ;;  %336 = vmatpush.msrb.mxu2 %v305_v18 }
  0x7e   :  { %v555_v22 = vpop.permute.xlu0 %554  ;;  %v565_v23 = vpop.permute.xlu1 %564 }
  0x7f   :  { %v556_v26 = vunpack.i.l.bf16 %v555_v22  ;;  %v557_v27 = vunpack.i.h.bf16 %v555_v22  ;;  %v566_v29 = vunpack.i.l.bf16 %v565_v23  ;;  %v567_v30 = vunpack.i.h.bf16 %v565_v23 }
  0x81   :  { %108 = vmatpush.msra.mxu1 %v557_v27  ;;  %v45_v31 = vsel %vm44_vm1, %v556_v26, %v557_v27  ;;  %366 = vmatpush.msrb.mxu3 %v567_v30  ;;  %v304_v33 = vsel %vm303_vm2, %v566_v29, %v567_v30 }
  0x82   :  { %79 = vmatpush.msra.mxu0 %v45_v31  ;;  %508 = vmatmul.msk.f32.vlgmr.msra.gmra.mxu1 %vm51_vm0, %v500_v28 }
  0x83   :  { %267 = vmatpush.msrb.mxu1 %v572_v21  ;;  %504 = vmatmul.msk.f32.vlgmr.msra.gmra.mxu0 %vm51_vm0, %v500_v28 }
  0x84   :  { %238 = vmatpush.msrb.mxu0 %v207_v32  ;;  %337 = vmatpush.msrb.mxu2 %v304_v33 }
  0x85   :  { %268 = vmatpush.msrb.mxu1 %v577_v25  ;;  %540 = vmatmul.msk.f32.vlgmr.msrb.gmra.mxu3 %vm51_vm0, %v532_v34 }
  0x86   :  { %239 = vmatpush.msrb.mxu0 %v206_v35  ;;  %536 = vmatmul.msk.f32.vlgmr.msrb.gmra.mxu2 %vm51_vm0, %v532_v34  ;;  %v395_v12 = vpop.permute.xlu0 %394  ;;  %v400_v30 = vpop.permute.xlu1 %399 }
  0x89   :  { %v180_v51 = vpop.f32.mrf.mxu3 }
  0x8a   :  { %509 = vmatmul.msk.f32.gmra.mxu1 %vm51_vm0, %v501_v36  ;;  %v151_v52 = vpop.f32.mrf.mxu2 }
  0x8b   :  { %505 = vmatmul.msk.f32.gmra.mxu0 %vm51_vm0, %v501_v36 }
  0x8d   :  { %541 = vmatmul.msk.f32.gmra.mxu3 %vm51_vm0, %v533_v37 }
  0x8e   :  { %537 = vmatmul.msk.f32.gmra.mxu2 %vm51_vm0, %v533_v37 }
  0x91   :  { %v183_v53 = vpop.f32.mrf.mxu3 }
  0x92   :  { %510 = vmatmul.msk.f32.gmra.mxu1 %vm51_vm0, %v502_v40  ;;  %v154_v54 = vpop.f32.mrf.mxu2 }
  0x93   :  { %506 = vmatmul.msk.f32.gmra.mxu0 %vm51_vm0, %v502_v40 }
  0x95   :  { %542 = vmatmul.msk.f32.gmra.mxu3 %vm51_vm0, %v534_v41 }
  0x96   :  { %538 = vmatmul.msk.f32.gmra.mxu2 %vm51_vm0, %v534_v41 }
  0x99   :  { %v186_v58 = vpop.f32.mrf.mxu3 }
  0x9a   :  { %511 = vmatmul.msk.f32.gmra.mxu1 %vm51_vm0, %v503_v43  ;;  %v157_v60 = vpop.f32.mrf.mxu2 }
  0x9b   :  { %507 = vmatmul.msk.f32.gmra.mxu0 %vm51_vm0, %v503_v43 }
  0x9d   :  { %543 = vmatmul.msk.f32.gmra.mxu3 %vm51_vm0, %v535_v44 }
  0x9e   :  { %539 = vmatmul.msk.f32.gmra.mxu2 %vm51_vm0, %v535_v44 }
  0xa1   :  { %v725_v63 = vpop.f32.mrf.mxu3 }
  0xa2   :  { %528 = vmatmul.msk.f32.vlgmr.msrb.gmra.mxu1 %vm51_vm0, %v520_v47  ;;  %v727_v0 = vpop.f32.mrf.mxu2 }
  0xa3   :  { %524 = vmatmul.msk.f32.vlgmr.msrb.gmra.mxu0 %vm51_vm0, %v520_v47 }
  0xaa   :  { %529 = vmatmul.msk.f32.gmra.mxu1 %vm51_vm0, %v521_v48 }
  0xab   :  { %525 = vmatmul.msk.f32.gmra.mxu0 %vm51_vm0, %v521_v48 }
  0xb2   :  { %530 = vmatmul.msk.f32.gmra.mxu1 %vm51_vm0, %v522_v49 }
  0xb3   :  { %526 = vmatmul.msk.f32.gmra.mxu0 %vm51_vm0, %v522_v49 }
  0xba   :  { %531 = vmatmul.msk.f32.gmra.mxu1 %vm51_vm0, %v523_v50 }
  0xbb   :  { %527 = vmatmul.msk.f32.gmra.mxu0 %vm51_vm0, %v523_v50 }
  0xff   :  { %v110_v55 = vpop.f32.mrf.mxu1 }
 0x100   :  { %v81_v56 = vpop.f32.mrf.mxu0  ;;  %v181_v5 = vadd.f32 %v180_v51, %v110_v55 }
 0x101   :  { %v152_v6 = vadd.f32 %v151_v52, %v81_v56  ;;  %v405_v52 = vpop.permute.xlu2 %404 }
 0x107   :  { %v113_v57 = vpop.f32.mrf.mxu1 }
 0x108   :  { %v84_v59 = vpop.f32.mrf.mxu0  ;;  %v368_v3 = vpop.f32.mrf.mxu3  ;;  %v184_v21 = vadd.f32 %v183_v53, %v113_v57 }
 0x109   :  { %v339_v4 = vpop.f32.mrf.mxu2  ;;  %v155_v23 = vadd.f32 %v154_v54, %v84_v59 }
 0x10f   :  { %v116_v61 = vpop.f32.mrf.mxu1 }
 0x110   :  { %v87_v62 = vpop.f32.mrf.mxu0  ;;  %v371_v15 = vpop.f32.mrf.mxu3  ;;  %v187_v40 = vadd.f32 %v186_v58, %v116_v61 }
 0x111   :  { %v342_v18 = vpop.f32.mrf.mxu2  ;;  %v158_v43 = vadd.f32 %v157_v60, %v87_v62 }
 0x117   :  { %v729_v1 = vpop.f32.mrf.mxu1 }
 0x118   :  { %v731_v2 = vpop.f32.mrf.mxu0  ;;  %v374_v39 = vpop.f32.mrf.mxu3  ;;  %v190_v62 = vadd.f32 %v725_v63, %v729_v1 }
 0x119   :  { %v345_v42 = vpop.f32.mrf.mxu2  ;;  %v410_v1 = vpop.permute.xlu1 %409 }
 0x11f   :  { %v270_v7 = vpop.f32.mrf.mxu1 }
 0x120   :  { %v283_v8 = vadd.f32 %v270_v7, %v181_v5  ;;  %v241_v9 = vpop.f32.mrf.mxu0  ;;  %v377_v7 = vpop.f32.mrf.mxu3 }
 0x121   :  { %v282_v10 = vadd.f32 %v241_v9, %v152_v6 }
 0x122   :  { %v381_v13 = vadd.f32 %v368_v3, %v283_v8 }
 0x123   :  { %v380_v14 = vadd.f32 %v339_v4, %v282_v10  ;;  %v161_v4 = vadd.f32 %v727_v0, %v731_v2 }
 0x124   :  { %v413_v17 = vadd.f32 %v395_v12, %v381_v13 }
 0x125   :  { %v412_v19 = vadd.f32 %v395_v12, %v380_v14  ;;  %v348_v12 = vpop.f32.mrf.mxu2 }
 0x126   :  { %v421_v22 = vmax.f32 %v413_v17, 0.0 }
 0x127   :  { %v420_v24 = vmax.f32 %v412_v19, 0.0  ;;  %v273_v25 = vpop.f32.mrf.mxu1 }
 0x128   :  { %v435_v26 = vmul.f32 %v736_v16, %v421_v22  ;;  %v285_v27 = vadd.f32 %v273_v25, %v184_v21  ;;  %v244_v28 = vpop.f32.mrf.mxu0 }
 0x129   :  { %v284_v29 = vadd.f32 %v244_v28, %v155_v23  ;;  %v434_v31 = vmul.f32 %v738_v20, %v420_v24 }
 0x12a   :  { %v383_v32 = vadd.f32 %v371_v15, %v285_v27  ;;  %v443_v33 = vsel %vm442_vm4, %v435_v26, 0.0  ;;  %v465_v36 = vmul.f32 %v435_v26, %v421_v22 }
 0x12b   :  { %v382_v34 = vadd.f32 %v342_v18, %v284_v29  ;;  %v444_v35 = vadd.f32 %v443_v33, %v434_v31  ;;  %v464_v46 = vmul.f32 %v434_v31, %v420_v24 }
 0x12c   :  { %v415_v37 = vadd.f32 %v400_v30, %v383_v32  ;;  %v472_v50 = vsel %vm442_vm4, %v465_v36, 0.0 }
 0x12d   :  { %v414_v38 = vadd.f32 %v400_v30, %v382_v34  ;;  %445 = vadd.xlane.f32.xlu2 %v444_v35  ;;  %v473_v58 = vadd.f32 %v472_v50, %v464_v46 }
 0x12e   :  { %v423_v41 = vmax.f32 %v415_v37, 0.0 }
 0x12f   :  { %v422_v44 = vmax.f32 %v414_v38, 0.0  ;;  %v276_v45 = vpop.f32.mrf.mxu1 }
 0x130   :  { %v437_v47 = vmul.f32 %v736_v16, %v423_v41  ;;  %v287_v48 = vadd.f32 %v276_v45, %v187_v40  ;;  %v247_v49 = vpop.f32.mrf.mxu0 }
 0x131   :  { %v286_v51 = vadd.f32 %v247_v49, %v158_v43  ;;  %v436_v53 = vmul.f32 %v738_v20, %v422_v44 }
 0x132   :  { %v385_v54 = vadd.f32 %v374_v39, %v287_v48  ;;  %v447_v55 = vsel %vm442_vm4, %v437_v47, 0.0  ;;  %v467_v59 = vmul.f32 %v437_v47, %v423_v41 }
 0x133   :  { %v384_v56 = vadd.f32 %v345_v42, %v286_v51  ;;  %v448_v57 = vadd.f32 %v447_v55, %v436_v53  ;;  %v466_v8 = vmul.f32 %v436_v53, %v422_v44 }
 0x134   :  { %v417_v60 = vadd.f32 %v405_v52, %v385_v54  ;;  %v476_v13 = vsel %vm442_vm4, %v467_v59, 0.0 }
 0x135   :  { %v416_v61 = vadd.f32 %v405_v52, %v384_v56  ;;  %449 = vadd.xlane.f32.xlu0 %v448_v57  ;;  %474 = vadd.xlane.f32.xlu2 %v473_v58  ;;  %v477_v2 = vadd.f32 %v476_v13, %v466_v8 }
 0x136   :  { %v425_v3 = vmax.f32 %v417_v60, 0.0 }
 0x137   :  { %v424_v5 = vmax.f32 %v416_v61, 0.0  ;;  %v279_v6 = vpop.f32.mrf.mxu1 }
 0x138   :  { %v439_v9 = vmul.f32 %v736_v16, %v425_v3  ;;  %v289_v10 = vadd.f32 %v279_v6, %v190_v62  ;;  %v250_v11 = vpop.f32.mrf.mxu0 }
 0x139   :  { %v288_v14 = vadd.f32 %v250_v11, %v161_v4  ;;  %v438_v15 = vmul.f32 %v738_v20, %v424_v5 }
 0x13a   :  { %v387_v17 = vadd.f32 %v377_v7, %v289_v10  ;;  %v451_v63 = vsel %vm442_vm4, %v439_v9, 0.0  ;;  %v469_v19 = vmul.f32 %v439_v9, %v425_v3 }
 0x13b   :  { %v386_v18 = vadd.f32 %v348_v12, %v288_v14  ;;  %v452_v0 = vadd.f32 %v451_v63, %v438_v15  ;;  %v468_v25 = vmul.f32 %v438_v15, %v424_v5 }
 0x13c   :  { %v419_v21 = vadd.f32 %v410_v1, %v387_v17  ;;  %v480_v26 = vsel %vm442_vm4, %v469_v19, 0.0 }
 0x13d   :  { %v418_v22 = vadd.f32 %v410_v1, %v386_v18  ;;  %453 = vadd.xlane.f32.xlu1 %v452_v0  ;;  %478 = vadd.xlane.f32.xlu0 %v477_v2  ;;  %v481_v30 = vadd.f32 %v480_v26, %v468_v25 }
 0x13e   :  { %v427_v23 = vmax.f32 %v419_v21, 0.0 }
 0x13f   :  { %v426_v24 = vmax.f32 %v418_v22, 0.0 }
 0x140   :  { %v441_v27 = vmul.f32 %v736_v16, %v427_v23 }
 0x141   :  { %v440_v28 = vmul.f32 %v738_v20, %v426_v24 }
 0x142   :  { %v455_v29 = vsel %vm442_vm4, %v441_v27, 0.0  ;;  %v471_v32 = vmul.f32 %v441_v27, %v427_v23 }
 0x143   :  { %v456_v31 = vadd.f32 %v455_v29, %v440_v28  ;;  %v470_v33 = vmul.f32 %v440_v28, %v426_v24 }
 0x144   :  { %v484_v34 = vsel %vm442_vm4, %v471_v32, 0.0 }
 0x145   :  { %482 = vadd.xlane.f32.xlu1 %v481_v30  ;;  %457 = vadd.xlane.f32.xlu2 %v456_v31  ;;  %v485_v35 = vadd.f32 %v484_v34, %v470_v33 }
 0x14d   :  { %486 = vadd.xlane.f32.xlu2 %v485_v35 }
 0x1a0   :  { %v446_v36 = vpop.xlane.xlu2 %445 }
 0x1a1   :  { %460 = vst.msk [vmem:[%s796_s4] sm:$0xff] %vm459_vm5, %v446_v36 }
 0x1a8   :  { %v450_v16 = vpop.xlane.xlu0 %449  ;;  %v475_v20 = vpop.xlane.xlu2 %474 }
 0x1a9   :  { %461 = vst.msk [vmem:[%s796_s4 + $0x8] sm:$0xff] %vm459_vm5, %v450_v16 }
 0x1aa   :  { %488 = vst.msk [vmem:[%s797_s5] sm:$0xff] %vm459_vm5, %v475_v20 }
 0x1b0   :  { %v454_v37 = vpop.xlane.xlu1 %453  ;;  %v479_v38 = vpop.xlane.xlu0 %478 }
 0x1b1   :  { %462 = vst.msk [vmem:[%s796_s4 + $0x10] sm:$0xff] %vm459_vm5, %v454_v37 }
 0x1b2   :  { %489 = vst.msk [vmem:[%s797_s5 + $0x8] sm:$0xff] %vm459_vm5, %v479_v38 }
 0x1b8   :  { %v483_v39 = vpop.xlane.xlu1 %482  ;;  %v458_v40 = vpop.xlane.xlu2 %457 }
 0x1b9   :  { %490 = vst.msk [vmem:[%s797_s5 + $0x10] sm:$0xff] %vm459_vm5, %v483_v39 }
 0x1ba   :  { %463 = vst.msk [vmem:[%s796_s4 + $0x18] sm:$0xff] %vm459_vm5, %v458_v40 }
 0x1c0   :  { %v487_v41 = vpop.xlane.xlu2 %486 }
 0x1c1   :  { %491 = vst.msk [vmem:[%s797_s5 + $0x18] sm:$0xff] %vm459_vm5, %v487_v41 }

</bundles_post_ra>
